<compile_context>
chip_gen: v7x
topology: tpu7x:2x2x1
jax: 0.10.0
libtpu: 0.0.40
codegen_flags: <defaults>
</compile_context>

<pallas_src>
import math

import jax
import jax.numpy as jnp
from jax import lax
from jax.experimental import pallas as pl
from jax.experimental.pallas import tpu as pltpu

EMB_DIM = 64
VOCAB = 128
PAD_IDX = 1
LN_EPS = 1e-5
SCALE_FACTOR = math.sqrt(EMB_DIM)


def _round_up(x, m):
    return (x + m - 1) // m * m


def _choose_tile_rows(n_rows, tile_rows):
    """Pick packed-row tile size (multiple of 8); prefer >= 2 grid steps."""
    n8 = _round_up(max(n_rows, 1), 8)
    cap = _round_up(max(min(tile_rows, 4096), 8), 8)  # v5e: stay well under
    if n8 <= cap:                                     # 16 MiB scoped VMEM
        if n8 >= 16:
            # split so a 2-TensorCore part (v7x) can shard the grid axis
            return _round_up((n8 + 1) // 2, 8)
        return n8
    return cap


def _make_kernel(approx_gelu):
    def kernel(ids_ref, thi_ref, tlo_ref, gamma_ref, beta_ref, mask_ref,
               out_ref):
        # ids_ref:   (TR, 2)   int32  token-id pairs (even, odd positions)
        # thi_ref:   (2V, 2D)  bf16   block-diag doubled table, bf16 hi part
        # tlo_ref:   (2V, 2D)  bf16   bf16 residual (table - hi)
        # gamma_ref: (1, 2D)   f32    LayerNorm weight, tiled twice in lanes
        # beta_ref:  (1, 2D)   f32    LayerNorm bias,   tiled twice in lanes
        # mask_ref:  (1, 2D)   f32    1.0 on lanes [0, D), 0.0 on [D, 2D)
        # out_ref:   (TR, 2D)         two packed token embeddings per row
        tr = out_ref.shape[0]
        v2 = thi_ref.shape[0]
        d2 = out_ref.shape[1]
        v = v2 // 2
        d = d2 // 2

        ids = ids_ref[...]
        ids0 = ids[:, 0:1]
        ids1 = ids[:, 1:2]

        # One-hot over the doubled vocab: column j < V matches token0 == j,
        # column j >= V matches token1 == j - V.  Two bf16 MXU passes
        # (hi + lo residual) reconstruct the f32 table values and yield both
        # 64-wide embeddings packed into one 128-lane row.
        col = lax.broadcasted_iota(jnp.int32, (tr, v2), 1)
        target = jnp.where(col < v, ids0, ids1 + v)              # (TR, 2V)
        one_hot = (col == target).astype(jnp.bfloat16)
        emb = (jnp.dot(one_hot, thi_ref[...],
                       preferred_element_type=jnp.float32)
               + jnp.dot(one_hot, tlo_ref[...],
                         preferred_element_type=jnp.float32))    # (TR, 2D)

        # Per-token LayerNorm over each 64-lane half, E[x^2] - mean^2 form
        # (eval-mode MaskedNorm('layer') == plain LayerNorm over emb dim).
        m = mask_ref[...]                                        # (1, 2D)
        inv_d = jnp.float32(1.0 / d)
        emb_sq = emb * emb
        sum_all = jnp.sum(emb, axis=-1, keepdims=True)           # (TR, 1)
        sum_l = jnp.sum(emb * m, axis=-1, keepdims=True)
        sq_all = jnp.sum(emb_sq, axis=-1, keepdims=True)
        sq_l = jnp.sum(emb_sq * m, axis=-1, keepdims=True)
        sum_r = sum_all - sum_l
        sq_r = sq_all - sq_l
        mean = (sum_r + m * (sum_l - sum_r)) * inv_d             # (TR, 2D)
        ex2 = (sq_r + m * (sq_l - sq_r)) * inv_d
        var = ex2 - mean * mean
        normed = (emb - mean) * lax.rsqrt(var + jnp.float32(LN_EPS))
        normed = normed * gamma_ref[...] + beta_ref[...]

        # GELU with the transformer scale folded into the 0.5 coefficient.
        coef = jnp.float32(0.5 * SCALE_FACTOR)
        if approx_gelu:
            c = jnp.float32(math.sqrt(2.0 / math.pi))
            a = jnp.float32(0.044715)
            inner = c * (normed + a * normed * normed * normed)
            gelu = coef * normed * (1.0 + jnp.tanh(inner))
        else:
            inv_sqrt2 = jnp.float32(1.0 / math.sqrt(2.0))
            gelu = coef * normed * (1.0 + lax.erf(normed * inv_sqrt2))

        out_ref[...] = gelu.astype(out_ref.dtype)

    return kernel


def prepare_embedding_params(table, gamma, beta):
    """Build the doubled / split tables once (outside the per-call path)."""
    V, D = table.shape
    zeros = jnp.zeros_like(table)
    table2 = jnp.concatenate(
        [jnp.concatenate([table, zeros], axis=1),
         jnp.concatenate([zeros, table], axis=1)], axis=0)       # (2V, 2D) f32
    t_hi = table2.astype(jnp.bfloat16)
    t_lo = (table2 - t_hi.astype(jnp.float32)).astype(jnp.bfloat16)
    gamma2 = jnp.concatenate([gamma, gamma]).reshape(1, 2 * D).astype(
        jnp.float32)
    beta2 = jnp.concatenate([beta, beta]).reshape(1, 2 * D).astype(jnp.float32)
    left_mask = (jnp.arange(2 * D) < D).astype(jnp.float32).reshape(1, 2 * D)
    return {"t_hi": t_hi, "t_lo": t_lo, "gamma2": gamma2, "beta2": beta2,
            "left_mask": left_mask, "vocab": V, "dim": D}


def embeddings_forward(ids, params, *, tile_rows=2048, approx_gelu=True,
                       out_dtype=jnp.float32):
    """ids: (B, S) int -> (B, S, D) out_dtype."""
    B, S = ids.shape
    V, D = params["vocab"], params["dim"]
    N = B * S

    ids_flat = ids.reshape(N).astype(jnp.int32)
    if N % 2:  # pad to an even token count with the padding index
        ids_flat = jnp.concatenate(
            [ids_flat, jnp.full((1,), PAD_IDX, jnp.int32)])
    n_rows = ids_flat.shape[0] // 2
    ids01 = ids_flat.reshape(n_rows, 2)                          # (rows, 2)

    tr = _choose_tile_rows(n_rows, tile_rows)
    n_rows_pad = _round_up(n_rows, tr)
    if n_rows_pad != n_rows:
        pad = jnp.full((n_rows_pad - n_rows, 2), PAD_IDX, jnp.int32)
        ids01 = jnp.concatenate([ids01, pad], axis=0)

    out = pl.pallas_call(
        _make_kernel(approx_gelu),
        out_shape=jax.ShapeDtypeStruct((n_rows_pad, 2 * D), out_dtype),
        grid_spec=pltpu.PrefetchScalarGridSpec(
            num_scalar_prefetch=0,
            grid=(n_rows_pad // tr,),
            in_specs=[
                pl.BlockSpec((tr, 2), lambda i: (i, 0)),          # ids pairs
                pl.BlockSpec((2 * V, 2 * D), lambda i: (0, 0)),   # table hi
                pl.BlockSpec((2 * V, 2 * D), lambda i: (0, 0)),   # table lo
                pl.BlockSpec((1, 2 * D), lambda i: (0, 0)),       # gamma
                pl.BlockSpec((1, 2 * D), lambda i: (0, 0)),       # beta
                pl.BlockSpec((1, 2 * D), lambda i: (0, 0)),       # left mask
            ],
            out_specs=pl.BlockSpec((tr, 2 * D), lambda i: (i, 0)),
        ),
        compiler_params=pltpu.CompilerParams(
            dimension_semantics=("parallel",)),
    )(ids01, params["t_hi"], params["t_lo"], params["gamma2"],
      params["beta2"], params["left_mask"])

    # Unpack: packed row i holds tokens (2i, 2i+1) side by side.
    return out[:n_rows].reshape(2 * n_rows, D)[:N].reshape(B, S, D)


def reference_forward(ids, table, gamma, beta, *, approx_gelu=True):
    emb = table[ids]                                             # (B, S, D)
    mean = jnp.mean(emb, axis=-1, keepdims=True)
    var = jnp.mean((emb - mean) ** 2, axis=-1, keepdims=True)
    normed = (emb - mean) / jnp.sqrt(var + LN_EPS)
    normed = normed * gamma + beta
    if approx_gelu:
        c = math.sqrt(2.0 / math.pi)
        gelu = 0.5 * normed * (1.0 + jnp.tanh(c * (normed
                                                   + 0.044715 * normed ** 3)))
    else:
        gelu = 0.5 * normed * (1.0 + lax.erf(normed / math.sqrt(2.0)))
    return gelu * SCALE_FACTOR


# TODO(synk): training-mode MaskedNorm (masked_select over variable-length
# sequences before the norm) is not implemented; only the eval-mode path of
# the PyTorch forward is covered.

if __name__ == "__main__":
    key = jax.random.PRNGKey(0)
    k_tab, k_ids1, k_ids2 = jax.random.split(key, 3)

    # Deterministic parameter init (nn.Embedding ~ N(0,1); padding row zeroed;
    # LayerNorm weight=1, bias=0 — PyTorch defaults).
    table = jax.random.normal(k_tab, (VOCAB, EMB_DIM), dtype=jnp.float32)
    table = table.at[PAD_IDX].set(0.0)
    gamma = jnp.ones((EMB_DIM,), dtype=jnp.float32)
    beta = jnp.zeros((EMB_DIM,), dtype=jnp.float32)
    params = prepare_embedding_params(table, gamma, beta)

    # Small canonical shape: batch=2, seq=8 (includes a padding token).
    B, S = 2, 8
    ids = jax.random.randint(k_ids1, (B, S), 0, VOCAB, dtype=jnp.int32)
    ids = ids.at[0, 0].set(PAD_IDX)

    # Default fast path (bf16 hi/lo gather + tanh GELU) vs matching reference.
    out = jax.block_until_ready(embeddings_forward(ids, params))
    ref = reference_forward(ids, table, gamma, beta, approx_gelu=True)
    assert out.shape == (B, S, EMB_DIM)
    assert jnp.max(jnp.abs(out - ref)) < 5e-3, "mismatch (approx GELU path)"

    # Exact-erf parity path (PyTorch nn.GELU default).
    out_e = jax.block_until_ready(
        embeddings_forward(ids, params, approx_gelu=False))
    ref_e = reference_forward(ids, table, gamma, beta, approx_gelu=False)
    assert jnp.max(jnp.abs(out_e - ref_e)) < 2e-3, "mismatch (exact GELU path)"

    # Odd token count + multi-step grid (exercises padding & tiling paths).
    B2, S2 = 3, 37
    ids2 = jax.random.randint(k_ids2, (B2, S2), 0, VOCAB, dtype=jnp.int32)
    out2 = jax.block_until_ready(
        embeddings_forward(ids2, params, tile_rows=16))
    ref2 = reference_forward(ids2, table, gamma, beta, approx_gelu=True)
    assert out2.shape == (B2, S2, EMB_DIM)
    assert jnp.max(jnp.abs(out2 - ref2)) < 5e-3, "mismatch (B=3,S=37)"

    print("KERNEL_OK")
</pallas_src>

<mosaic_0001>
module attributes {stable_mosaic.version = 11 : i64} {
  func.func @kernel(%arg0: i32, %arg1: memref<8x2xi32, #tpu.memory_space<vmem>>, %arg2: memref<256x128xbf16, #tpu.memory_space<vmem>>, %arg3: memref<256x128xbf16, #tpu.memory_space<vmem>>, %arg4: memref<1x128xf32, #tpu.memory_space<vmem>>, %arg5: memref<1x128xf32, #tpu.memory_space<vmem>>, %arg6: memref<1x128xf32, #tpu.memory_space<vmem>>, %arg7: memref<8x128xf32, #tpu.memory_space<vmem>>) attributes {dimension_semantics = [#tpu.dimension_semantics<parallel>], iteration_bounds = array<i64: 1>, scalar_prefetch = 0 : i64, scratch_operands = 0 : i64, tpu.core_type = #tpu.core_type<tc>, window_params = [{transform_indices = @transform_0, window_bounds = array<i64: 8, 2>}, {pipeline_mode = #tpu.pipeline_mode<synchronous>, transform_indices = @transform_1, window_bounds = array<i64: 256, 128>}, {pipeline_mode = #tpu.pipeline_mode<synchronous>, transform_indices = @transform_2, window_bounds = array<i64: 256, 128>}, {pipeline_mode = #tpu.pipeline_mode<synchronous>, transform_indices = @transform_3, window_bounds = array<i64: 1, 128>}, {pipeline_mode = #tpu.pipeline_mode<synchronous>, transform_indices = @transform_4, window_bounds = array<i64: 1, 128>}, {pipeline_mode = #tpu.pipeline_mode<synchronous>, transform_indices = @transform_5, window_bounds = array<i64: 1, 128>}, {transform_indices = @transform_6, window_bounds = array<i64: 8, 128>}]} {
    %c0 = arith.constant 0 : index
    %c0_0 = arith.constant 0 : index
    %0 = vector.load %arg1[%c0, %c0_0] : memref<8x2xi32, #tpu.memory_space<vmem>>, vector<8x2xi32>
    %1 = vector.extract_strided_slice %0 {offsets = [0, 0], sizes = [8, 1], strides = [1, 1]} : vector<8x2xi32> to vector<8x1xi32>
    %2 = vector.extract_strided_slice %0 {offsets = [0, 1], sizes = [8, 1], strides = [1, 1]} : vector<8x2xi32> to vector<8x1xi32>
    %3 = tpu.iota {dimensions = array<i32: 1>} : vector<8x256xi32>
    %c128_i32 = arith.constant 128 : i32
    %4 = vector.broadcast %c128_i32 : i32 to vector<8x256xi32>
    %5 = arith.cmpi slt, %3, %4 : vector<8x256xi32>
    %c128_i32_1 = arith.constant 128 : i32
    %6 = vector.broadcast %c128_i32_1 : i32 to vector<8x1xi32>
    %7 = arith.addi %2, %6 : vector<8x1xi32>
    %8 = vector.shape_cast %1 : vector<8x1xi32> to vector<8x1xi32>
    %9 = vector.broadcast %8 : vector<8x1xi32> to vector<8x256xi32>
    %10 = vector.shape_cast %7 : vector<8x1xi32> to vector<8x1xi32>
    %11 = vector.broadcast %10 : vector<8x1xi32> to vector<8x256xi32>
    %12 = arith.select %5, %9, %11 : vector<8x256xi1>, vector<8x256xi32>
    %13 = arith.cmpi eq, %3, %12 : vector<8x256xi32>
    %14 = arith.extui %13 : vector<8x256xi1> to vector<8x256xi32>
    %15 = arith.sitofp %14 : vector<8x256xi32> to vector<8x256xf32>
    %16 = arith.truncf %15 : vector<8x256xf32> to vector<8x256xbf16>
    %c0_2 = arith.constant 0 : index
    %c0_3 = arith.constant 0 : index
    %17 = vector.load %arg2[%c0_2, %c0_3] : memref<256x128xbf16, #tpu.memory_space<vmem>>, vector<256x128xbf16>
    %cst = arith.constant dense<0.000000e+00> : vector<8x128xf32>
    %18 = tpu.matmul %16, %17, %cst {dimension_numbers = #tpu.dot_dimension_numbers<[1], [0], [0], [1], [0, 0, 1, 1], [], []>} : vector<8x256xbf16>, vector<256x128xbf16>, vector<8x128xf32> -> vector<8x128xf32>
    %c0_4 = arith.constant 0 : index
    %c0_5 = arith.constant 0 : index
    %19 = vector.load %arg3[%c0_4, %c0_5] : memref<256x128xbf16, #tpu.memory_space<vmem>>, vector<256x128xbf16>
    %cst_6 = arith.constant dense<0.000000e+00> : vector<8x128xf32>
    %20 = tpu.matmul %16, %19, %cst_6 {dimension_numbers = #tpu.dot_dimension_numbers<[1], [0], [0], [1], [0, 0, 1, 1], [], []>} : vector<8x256xbf16>, vector<256x128xbf16>, vector<8x128xf32> -> vector<8x128xf32>
    %21 = arith.addf %18, %20 : vector<8x128xf32>
    %c0_7 = arith.constant 0 : index
    %c0_8 = arith.constant 0 : index
    %22 = vector.load %arg6[%c0_7, %c0_8] : memref<1x128xf32, #tpu.memory_space<vmem>>, vector<1x128xf32>
    %23 = arith.mulf %21, %21 : vector<8x128xf32>
    %cst_9 = arith.constant dense<0.000000e+00> : vector<8xf32>
    %24 = vector.multi_reduction <add>, %21, %cst_9 [1] : vector<8x128xf32> to vector<8xf32>
    %25 = vector.shape_cast %24 : vector<8xf32> to vector<8x1xf32>
    %26 = vector.broadcast %22 : vector<1x128xf32> to vector<8x128xf32>
    %27 = arith.mulf %21, %26 : vector<8x128xf32>
    %cst_10 = arith.constant dense<0.000000e+00> : vector<8xf32>
    %28 = vector.multi_reduction <add>, %27, %cst_10 [1] : vector<8x128xf32> to vector<8xf32>
    %29 = vector.shape_cast %28 : vector<8xf32> to vector<8x1xf32>
    %cst_11 = arith.constant dense<0.000000e+00> : vector<8xf32>
    %30 = vector.multi_reduction <add>, %23, %cst_11 [1] : vector<8x128xf32> to vector<8xf32>
    %31 = vector.shape_cast %30 : vector<8xf32> to vector<8x1xf32>
    %32 = vector.broadcast %22 : vector<1x128xf32> to vector<8x128xf32>
    %33 = arith.mulf %23, %32 : vector<8x128xf32>
    %cst_12 = arith.constant dense<0.000000e+00> : vector<8xf32>
    %34 = vector.multi_reduction <add>, %33, %cst_12 [1] : vector<8x128xf32> to vector<8xf32>
    %35 = vector.shape_cast %34 : vector<8xf32> to vector<8x1xf32>
    %36 = arith.subf %25, %29 : vector<8x1xf32>
    %37 = arith.subf %31, %35 : vector<8x1xf32>
    %38 = arith.subf %29, %36 : vector<8x1xf32>
    %39 = vector.broadcast %22 : vector<1x128xf32> to vector<8x128xf32>
    %40 = vector.broadcast %38 : vector<8x1xf32> to vector<8x128xf32>
    %41 = arith.mulf %39, %40 : vector<8x128xf32>
    %42 = vector.broadcast %36 : vector<8x1xf32> to vector<8x128xf32>
    %43 = arith.addf %42, %41 : vector<8x128xf32>
    %cst_13 = arith.constant 1.562500e-02 : f32
    %44 = vector.broadcast %cst_13 : f32 to vector<8x128xf32>
    %45 = arith.mulf %43, %44 : vector<8x128xf32>
    %46 = arith.subf %35, %37 : vector<8x1xf32>
    %47 = vector.broadcast %22 : vector<1x128xf32> to vector<8x128xf32>
    %48 = vector.broadcast %46 : vector<8x1xf32> to vector<8x128xf32>
    %49 = arith.mulf %47, %48 : vector<8x128xf32>
    %50 = vector.broadcast %37 : vector<8x1xf32> to vector<8x128xf32>
    %51 = arith.addf %50, %49 : vector<8x128xf32>
    %cst_14 = arith.constant 1.562500e-02 : f32
    %52 = vector.broadcast %cst_14 : f32 to vector<8x128xf32>
    %53 = arith.mulf %51, %52 : vector<8x128xf32>
    %54 = arith.mulf %45, %45 : vector<8x128xf32>
    %55 = arith.subf %53, %54 : vector<8x128xf32>
    %56 = arith.subf %21, %45 : vector<8x128xf32>
    %cst_15 = arith.constant 9.99999974E-6 : f32
    %57 = vector.broadcast %cst_15 : f32 to vector<8x128xf32>
    %58 = arith.addf %55, %57 : vector<8x128xf32>
    %59 = math.rsqrt %58 : vector<8x128xf32>
    %60 = arith.mulf %56, %59 : vector<8x128xf32>
    %c0_16 = arith.constant 0 : index
    %c0_17 = arith.constant 0 : index
    %61 = vector.load %arg4[%c0_16, %c0_17] : memref<1x128xf32, #tpu.memory_space<vmem>>, vector<1x128xf32>
    %62 = vector.broadcast %61 : vector<1x128xf32> to vector<8x128xf32>
    %63 = arith.mulf %60, %62 : vector<8x128xf32>
    %c0_18 = arith.constant 0 : index
    %c0_19 = arith.constant 0 : index
    %64 = vector.load %arg5[%c0_18, %c0_19] : memref<1x128xf32, #tpu.memory_space<vmem>>, vector<1x128xf32>
    %65 = vector.broadcast %64 : vector<1x128xf32> to vector<8x128xf32>
    %66 = arith.addf %63, %65 : vector<8x128xf32>
    %cst_20 = arith.constant 4.471500e-02 : f32
    %67 = vector.broadcast %cst_20 : f32 to vector<8x128xf32>
    %68 = arith.mulf %67, %66 : vector<8x128xf32>
    %69 = arith.mulf %68, %66 : vector<8x128xf32>
    %70 = arith.mulf %69, %66 : vector<8x128xf32>
    %71 = arith.addf %66, %70 : vector<8x128xf32>
    %cst_21 = arith.constant 0.797884583 : f32
    %72 = vector.broadcast %cst_21 : f32 to vector<8x128xf32>
    %73 = arith.mulf %72, %71 : vector<8x128xf32>
    %cst_22 = arith.constant 4.000000e+00 : f32
    %74 = vector.broadcast %cst_22 : f32 to vector<8x128xf32>
    %75 = arith.mulf %74, %66 : vector<8x128xf32>
    %76 = math.tanh %73 : vector<8x128xf32>
    %cst_23 = arith.constant 1.000000e+00 : f32
    %77 = vector.broadcast %cst_23 : f32 to vector<8x128xf32>
    %78 = arith.addf %77, %76 : vector<8x128xf32>
    %79 = arith.mulf %75, %78 : vector<8x128xf32>
    %c0_24 = arith.constant 0 : index
    %c0_25 = arith.constant 0 : index
    %80 = vector.load %arg7[%c0_24, %c0_25] : memref<8x128xf32, #tpu.memory_space<vmem>>, vector<8x128xf32>
    tpu.vector_store %arg7[%c0_24, %c0_25], %79 {strides = array<i32>} : memref<8x128xf32, #tpu.memory_space<vmem>>, vector<8x128xf32>,
    return
  }
  func.func @transform_0(%arg0: i32) -> (i32, i32) {
    %c0_i32 = arith.constant 0 : i32
    %c0_i32_0 = arith.constant 0 : i32
    return %arg0, %c0_i32 : i32, i32
  }
  func.func @transform_1(%arg0: i32) -> (i32, i32) {
    %c0_i32 = arith.constant 0 : i32
    %c0_i32_0 = arith.constant 0 : i32
    %c0_i32_1 = arith.constant 0 : i32
    return %c0_i32, %c0_i32_0 : i32, i32
  }
  func.func @transform_2(%arg0: i32) -> (i32, i32) {
    %c0_i32 = arith.constant 0 : i32
    %c0_i32_0 = arith.constant 0 : i32
    %c0_i32_1 = arith.constant 0 : i32
    return %c0_i32, %c0_i32_0 : i32, i32
  }
  func.func @transform_3(%arg0: i32) -> (i32, i32) {
    %c0_i32 = arith.constant 0 : i32
    %c0_i32_0 = arith.constant 0 : i32
    %c0_i32_1 = arith.constant 0 : i32
    return %c0_i32, %c0_i32_0 : i32, i32
  }
  func.func @transform_4(%arg0: i32) -> (i32, i32) {
    %c0_i32 = arith.constant 0 : i32
    %c0_i32_0 = arith.constant 0 : i32
    %c0_i32_1 = arith.constant 0 : i32
    return %c0_i32, %c0_i32_0 : i32, i32
  }
  func.func @transform_5(%arg0: i32) -> (i32, i32) {
    %c0_i32 = arith.constant 0 : i32
    %c0_i32_0 = arith.constant 0 : i32
    %c0_i32_1 = arith.constant 0 : i32
    return %c0_i32, %c0_i32_0 : i32, i32
  }
  func.func @transform_6(%arg0: i32) -> (i32, i32) {
    %c0_i32 = arith.constant 0 : i32
    %c0_i32_0 = arith.constant 0 : i32
    return %arg0, %c0_i32 : i32, i32
  }
}

</mosaic_0001>

<bundles_post_ra>
// kernel: tpu_custom_call.1
= control target key start
LH: loop header
LB: loop body
LE: loop exit
PB: predicated region body
PF: predicated region fallthrough
CT: control target
= control target key end

     0   :  { %11 = vsyncpa [#allocation3], 0  ;;  %s787_s0 = inlined_call_operand.vmem [shape: s32[8,2], index: 0, kind: input, shape index: {}]   ;;  %s788_s1 = inlined_call_operand.hbm [shape: bf16[256,128], index: 1, kind: input, shape index: {}]   ;;  %s789_s2 = inlined_call_operand.hbm [shape: bf16[256,128], index: 2, kind: input, shape index: {}]   ;;  %s790_s3 = inlined_call_operand.vmem [shape: f32[1,128], index: 3, kind: input, shape index: {}]   ;;  %s791_s4 = inlined_call_operand.vmem [shape: f32[1,128], index: 4, kind: input, shape index: {}]   ;;  %s792_s5 = inlined_call_operand.vmem [shape: f32[1,128], index: 5, kind: input, shape index: {}]   ;;  %s793_s6 = inlined_call_operand.hbm [shape: f32[8,128], index: 6, kind: output, shape index: {}]  }
   0x1   :  { %12 = vsyncpa [#allocation6], 0 }
   0x2   :  { %13 = vsyncpa [#allocation4], 0  ;;  %s696_s21 = smov [#allocation2]   ;;  %s624_s25 = scalar_lea.hbm %s788_s1, 2048 }
   0x3   :  { %s21_s22 = sshll.u32 %s696_s21, 4  ;;  %p625_p0 = scmp.ne.s32.totalorder %s788_s1, %s624_s25  ;;  %s22_s22 = int_to_ptr.vmem [resolvable:$true] %s21_s22 }
   0x4   :  { %p628_p1 = scmp.lt.u32.totalorder %s624_s25, %s788_s1 }
   0x6   :  { %p630_p2 = pnand %p628_p1, %p625_p0 }
   0x8   :  { %633 = shalt.err (!%p630_p2)
}
   0x9   :  { %s634_s30 = scalar_lea.vmem %s22_s22, 2048  ;;  %p639_p4 = scmp.lt.s32.totalorder %s22_s22, %s22_s22 }
   0xa   :  { %p635_p3 = scmp.ne.s32.totalorder %s22_s22, %s634_s30  ;;  %p640_p5 = scmp.lt.s32.totalorder %s634_s30, %s634_s30 }
   0xc   :  { %p641_p6 = por %p640_p5, %p639_p4 }
   0xe   :  { %p642_p7 = pnand %p641_p6, %p635_p3 }
  0x10   :  { %645 = shalt.err (!%p642_p7)
}
  0x11   :  { %s697_s7 = smov 64   ;;  %s698_s8 = smov 4  }
  0x12   :  { %27 = dma.hbm_to_vmem [thread:$0]  %s788_s1, 2048, %s22_s22, [#allocation3], %s697_s7, %s697_s7, %s698_s8  }
  0x13   :  { %s699_s11 = smov [#allocation5]   ;;  %s646_s15 = scalar_lea.hbm %s789_s2, 2048 }
  0x14   :  { %s33_s12 = sshll.u32 %s699_s11, 4  ;;  %p647_p8 = scmp.ne.s32.totalorder %s789_s2, %s646_s15  ;;  %s34_s12 = int_to_ptr.vmem [resolvable:$true] %s33_s12 }
  0x15   :  { %p650_p9 = scmp.lt.u32.totalorder %s646_s15, %s789_s2 }
  0x17   :  { %p652_p10 = pnand %p650_p9, %p647_p8 }
  0x19   :  { %655 = shalt.err (!%p652_p10)
}
  0x1a   :  { %s656_s20 = scalar_lea.vmem %s34_s12, 2048  ;;  %p661_p12 = scmp.lt.s32.totalorder %s34_s12, %s34_s12 }
  0x1b   :  { %p657_p11 = scmp.ne.s32.totalorder %s34_s12, %s656_s20  ;;  %p662_p13 = scmp.lt.s32.totalorder %s656_s20, %s656_s20 }
  0x1d   :  { %p663_p0 = por %p662_p13, %p661_p12 }
  0x1f   :  { %p664_p1 = pnand %p663_p0, %p657_p11 }
  0x21   :  { %667 = shalt.err (!%p664_p1)
}
  0x22   :  { %39 = dma.hbm_to_vmem [thread:$0]  %s789_s2, 2048, %s34_s12, [#allocation6], %s697_s7, %s697_s7, %s698_s8  }
  0x23   :  { %690 = dma.done.wait [#allocation3], 2048  }
  0x24   :  { %691 = vsyncadd [#allocation3], 4294965248 }
  0x25   :  { %692 = dma.done.wait [#allocation6], 2048  }
  0x26   :  { %693 = vsyncadd [#allocation6], 4294965248  ;;  %v700_v0 = vmov 1   ;;  %v53_v1 = vld [vmem:[%s787_s0] sm:$0xff]  ;;  %v592_v7 = vld [vmem:[#allocation5 + $0x48] sm:$0xff]   ;;  %v701_v9 = vmov 0   ;;  %v54_v36 = vlaneseq }
  0x27   :  { %585 = vset.pattern.permute.xlu0 %v700_v0  ;;  %v59_v2 = vadd.s32 128, %v53_v1  ;;  %v588_v3 = vld [vmem:[#allocation5 + $0x40] sm:$0xff]   ;;  %v593_v8 = vld [vmem:[#allocation2 + $0x48] sm:$0xff]   ;;  %v596_v12 = vld [vmem:[#allocation5 + $0x50] sm:$0xff]   ;;  %v702_v40 = vmov 1.0|1.0  }
  0x28   :  { %v589_v4 = vld [vmem:[#allocation2 + $0x40] sm:$0xff]   ;;  %533 = vmatprep.subr.bf16.mxu0 %v588_v3  ;;  %v594_v10 = vld [vmem:[#allocation5 + $0x8] sm:$0xff]   ;;  %v597_v13 = vld [vmem:[#allocation2 + $0x50] sm:$0xff]   ;;  %v55_v37 = vand.u32 127, %v54_v36  ;;  %s703_s27 = smov [#allocation7]  }
  0x29   :  { %64 = vperm.xlu0 %585, %v59_v2   ;;  %v590_v5 = vld [vmem:[#allocation5] sm:$0xff]   ;;  %555 = vmatprep.subr.bf16.mxu1 %v589_v4  ;;  %v595_v11 = vld [vmem:[#allocation2 + $0x8] sm:$0xff]   ;;  %v598_v14 = vld [vmem:[#allocation5 + $0x10] sm:$0xff]   ;;  %s478_s28 = sshll.u32 %s703_s27, 4  ;;  %s479_s28 = int_to_ptr.vmem [resolvable:$true] %s478_s28 }
  0x2a   :  { %v591_v6 = vld [vmem:[#allocation2] sm:$0xff]   ;;  %534 = vmatpush3.bf16.msra.mxu0 %v590_v5  ;;  %v599_v15 = vld [vmem:[#allocation2 + $0x10] sm:$0xff]   ;;  %v600_v16 = vld [vmem:[#allocation5 + $0x58] sm:$0xff]   ;;  %v56_v38 = vadd.s32 128, %v55_v37  ;;  %p673_p3 = scmp.lt.s32.totalorder %s479_s28, %s479_s28 }
  0x2b   :  { %556 = vmatpush3.bf16.msra.mxu1 %v591_v6  ;;  %535 = vmatprep.subr.bf16.mxu0 %v592_v7  ;;  %v601_v17 = vld [vmem:[#allocation2 + $0x58] sm:$0xff]   ;;  %v604_v20 = vld [vmem:[#allocation5 + $0x60] sm:$0xff]   ;;  %v608_v24 = vld [vmem:[#allocation5 + $0x68] sm:$0xff]  }
  0x2c   :  { %557 = vmatprep.subr.bf16.mxu1 %v593_v8  ;;  %v602_v18 = vld [vmem:[#allocation5 + $0x18] sm:$0xff]   ;;  %v605_v21 = vld [vmem:[#allocation2 + $0x60] sm:$0xff]   ;;  %v609_v25 = vld [vmem:[#allocation2 + $0x68] sm:$0xff]  }
  0x2d   :  { %586 = vset.pattern.permute.xlu0 %v701_v9  ;;  %v603_v19 = vld [vmem:[#allocation2 + $0x18] sm:$0xff]   ;;  %v606_v22 = vld [vmem:[#allocation5 + $0x20] sm:$0xff]   ;;  %v610_v26 = vld [vmem:[#allocation5 + $0x28] sm:$0xff]  }
  0x2e   :  { %61 = vperm.xlu0 %586, %v53_v1   ;;  %536 = vmatpush3.bf16.msra.mxu0 %v594_v10  ;;  %v607_v23 = vld [vmem:[#allocation2 + $0x20] sm:$0xff]   ;;  %v611_v27 = vld [vmem:[#allocation2 + $0x28] sm:$0xff]   ;;  %v612_v28 = vld [vmem:[#allocation5 + $0x70] sm:$0xff]  }
  0x2f   :  { %558 = vmatpush3.bf16.msra.mxu1 %v595_v11  ;;  %537 = vmatprep.subr.bf16.mxu0 %v596_v12  ;;  %v613_v29 = vld [vmem:[#allocation2 + $0x70] sm:$0xff]   ;;  %v616_v32 = vld [vmem:[#allocation5 + $0x78] sm:$0xff]   ;;  %v530_v53 = vld [vmem:[%s792_s5] ss:$0 sm:$0xff] }
  0x30   :  { %559 = vmatprep.subr.bf16.mxu1 %v597_v13  ;;  %v614_v30 = vld [vmem:[#allocation5 + $0x30] sm:$0xff]   ;;  %v617_v33 = vld [vmem:[#allocation2 + $0x78] sm:$0xff]   ;;  %v531_v12 = vld [vmem:[%s790_s3] ss:$0 sm:$0xff]  ;;  %s668_s3 = scalar_lea.vmem %s479_s28, 128 }
  0x31   :  { %v615_v31 = vld [vmem:[#allocation2 + $0x30] sm:$0xff]   ;;  %v618_v34 = vld [vmem:[#allocation5 + $0x38] sm:$0xff]   ;;  %p669_p2 = scmp.ne.s32.totalorder %s479_s28, %s668_s3  ;;  %p674_p4 = scmp.lt.s32.totalorder %s668_s3, %s668_s3 }
  0x32   :  { %587 = vset.pattern.permute.xlu0 %v700_v0  ;;  %538 = vmatpush3.bf16.msra.mxu0 %v598_v14  ;;  %v619_v35 = vld [vmem:[#allocation2 + $0x38] sm:$0xff]   ;;  %v532_v14 = vld [vmem:[%s791_s4] ss:$0 sm:$0xff] }
  0x33   :  { %560 = vmatpush3.bf16.msra.mxu1 %v599_v15  ;;  %539 = vmatprep.subr.bf16.mxu0 %v600_v16  ;;  %p675_p5 = por %p674_p4, %p673_p3 }
  0x34   :  { %561 = vmatprep.subr.bf16.mxu1 %v601_v17 }
  0x35   :  { %p676_p6 = pnand %p675_p5, %p669_p2 }
  0x36   :  { %540 = vmatpush3.bf16.msra.mxu0 %v602_v18 }
  0x37   :  { %562 = vmatpush3.bf16.msra.mxu1 %v603_v19  ;;  %541 = vmatprep.subr.bf16.mxu0 %v604_v20 }
  0x38   :  { %563 = vmatprep.subr.bf16.mxu1 %v605_v21 }
  0x3a   :  { %542 = vmatpush3.bf16.msra.mxu0 %v606_v22 }
  0x3b   :  { %564 = vmatpush3.bf16.msra.mxu1 %v607_v23  ;;  %543 = vmatprep.subr.bf16.mxu0 %v608_v24 }
  0x3c   :  { %565 = vmatprep.subr.bf16.mxu1 %v609_v25 }
  0x3e   :  { %544 = vmatpush3.bf16.msra.mxu0 %v610_v26 }
  0x3f   :  { %566 = vmatpush3.bf16.msra.mxu1 %v611_v27  ;;  %545 = vmatprep.subr.bf16.mxu0 %v612_v28 }
  0x40   :  { %567 = vmatprep.subr.bf16.mxu1 %v613_v29 }
  0x42   :  { %546 = vmatpush3.bf16.msra.mxu0 %v614_v30 }
  0x43   :  { %568 = vmatpush3.bf16.msra.mxu1 %v615_v31  ;;  %547 = vmatprep.subr.bf16.mxu0 %v616_v32 }
  0x44   :  { %569 = vmatprep.subr.bf16.mxu1 %v617_v33 }
  0x46   :  { %548 = vmatpush3.bf16.msra.mxu0 %v618_v34 }
  0x47   :  { %570 = vmatpush3.bf16.msra.mxu1 %v619_v35 }
  0xa8   :  { %v65_v39 = vpop.permute.xlu0 %64 }
  0xa9   :  { %vm69_vm0 = vcmp.eq.s32.totalorder %v56_v38, %v65_v39 }
  0xaa   :  { %vm506_vm1 = vmpackc.low %vm69_vm0, %vm69_vm0 }
  0xab   :  { %507 = vmatprep.mubr.msk.bf16.mxu0 %vm506_vm1, %v702_v40  ;;  %527 = vmatprep.mubr.msk.bf16.mxu1 %vm506_vm1, %v702_v40 }
  0xad   :  { %v62_v41 = vpop.permute.xlu0 %61 }
  0xae   :  { %vm68_vm2 = vcmp.eq.s32.totalorder %v55_v37, %v62_v41 }
  0xaf   :  { %vm508_vm3 = vmpackc.low %vm68_vm2, %vm68_vm2 }
  0xb0   :  { %509 = vmatmul.mubr.msk.bf16.vlgmr.msra.gmra.mrb[0].mxu0 %vm508_vm3, %v702_v40  ;;  %529 = vmatmul.mubr.msk.bf16.vlgmr.msra.gmra.mrb[0].mxu1 %vm508_vm3, %v702_v40 }
 0x183   :  { %v549_v42 = vpop.f32.mrb[0].mxu0  ;;  %v571_v43 = vpop.f32.mrb[0].mxu1 }
 0x184   :  { %v550_v44 = vpop.f32.mrb[1].mxu0  ;;  %v572_v45 = vpop.f32.mrb[1].mxu1 }
 0x185   :  { %v551_v46 = vadd.f32 %v550_v44, %v549_v42  ;;  %v573_v47 = vadd.f32 %v572_v45, %v571_v43  ;;  %v552_v48 = vpop.f32.mrb[2].mxu0  ;;  %v574_v49 = vpop.f32.mrb[2].mxu1 }
 0x186   :  { %v553_v50 = vpop.f32.mrb[3].mxu0  ;;  %v575_v51 = vpop.f32.mrb[3].mxu1 }
 0x187   :  { %v407_v52 = vadd.f32 %v573_v47, %v551_v46 }
 0x189   :  { %414 = vadd.xlane.f32.xlu1 %v407_v52  ;;  %v413_v54 = vmul.f32 %v407_v52, %v407_v52  ;;  %v422_v55 = vmul.f32 %v530_v53, %v407_v52 }
 0x18b   :  { %v427_v56 = vmul.f32 %v530_v53, %v413_v54 }
 0x18d   :  { %423 = vadd.xlane.f32.xlu1 %v422_v55  ;;  %428 = vadd.xlane.f32.xlu0 %v427_v56 }
 0x191   :  { %425 = vadd.xlane.f32.xlu1 %v413_v54 }
 0x216   :  { %v415_v57 = vpop.xlane.xlu1 %414 }
 0x21a   :  { %v424_v58 = vpop.xlane.xlu1 %423  ;;  %v429_v61 = vpop.xlane.xlu0 %428 }
 0x21b   :  { %v430_v59 = vsub.f32 %v415_v57, %v424_v58 }
 0x21d   :  { %v432_v60 = vsub.f32 %v424_v58, %v430_v59 }
 0x21e   :  { %v426_v62 = vpop.xlane.xlu1 %425 }
 0x21f   :  { %v433_v63 = vmul.f32 %v530_v53, %v432_v60  ;;  %v431_v0 = vsub.f32 %v426_v62, %v429_v61 }
 0x221   :  { %v434_v1 = vadd.f32 %v433_v63, %v430_v59  ;;  %v436_v2 = vsub.f32 %v429_v61, %v431_v0 }
 0x223   :  { %v435_v3 = vmul.f32 0.015625, %v434_v1  ;;  %v437_v4 = vmul.f32 %v530_v53, %v436_v2 }
 0x225   :  { %v438_v5 = vadd.f32 %v437_v4, %v431_v0  ;;  %v440_v6 = vmul.f32 %v435_v3, %v435_v3  ;;  %v442_v10 = vsub.f32 %v407_v52, %v435_v3 }
 0x227   :  { %v439_v7 = vmul.f32 0.015625, %v438_v5 }
 0x229   :  { %v441_v8 = vsub.f32 %v439_v7, %v440_v6 }
 0x22b   :  { %v443_v9 = vadd.f32 1e-05, %v441_v8 }
 0x22d   :  { %620 = vrsqrt.f32 %v443_v9 }
 0x237   :  { %v621_v11 = vpop.eup %620 }
 0x238   :  { %v445_v13 = vmul.f32 %v621_v11, %v442_v10 }
 0x23a   :  { %v453_v15 = vmul.f32 %v531_v12, %v445_v13 }
 0x23c   :  { %v461_v16 = vadd.f32 %v532_v14, %v453_v15 }
 0x23e   :  { %v462_v17 = vmul.f32 0.044715, %v461_v16  ;;  %v467_v23 = vmul.f32 4.0, %v461_v16 }
 0x240   :  { %v463_v18 = vmul.f32 %v462_v17, %v461_v16 }
 0x242   :  { %v464_v19 = vmul.f32 %v463_v18, %v461_v16 }
 0x244   :  { %v465_v20 = vadd.f32 %v464_v19, %v461_v16 }
 0x246   :  { %v466_v21 = vmul.f32 0.7978846, %v465_v20 }
 0x248   :  { %622 = vtanh.f32 %v466_v21 }
 0x252   :  { %v623_v22 = vpop.eup %622 }
 0x253   :  { %v469_v24 = vadd.f32 1.0, %v623_v22 }
 0x255   :  { %v470_v25 = vmul.f32 %v469_v24, %v467_v23 }
 0x257   :  { %471 = vst [vmem:[#allocation7] sm:$0xff] %v470_v25 }
 0x258   :  { %679 = shalt.err (!%p676_p6)
}
 0x259   :  { %s680_s30 = scalar_lea.hbm %s793_s6, 128 }
 0x25a   :  { %p681_p7 = scmp.ne.s32.totalorder %s793_s6, %s680_s30  ;;  %p684_p8 = scmp.lt.u32.totalorder %s680_s30, %s793_s6 }
 0x25c   :  { %p686_p9 = pnand %p684_p8, %p681_p7 }
 0x25e   :  { %689 = shalt.err (!%p686_p9)
}
 0x25f   :  { %481 = dma.vmem_to_hbm [thread:$0]  %s479_s28, 128, %s793_s6, [#allocation4]  }
 0x260   :  { %694 = dma.done.wait [#allocation4], 128  }
 0x261   :  { %695 = vsyncadd [#allocation4], 4294967168 }
 0x262   :  { %485 = vsyncpa [#allocation3], 1 }
 0x263   :  { %486 = vsyncpa [#allocation6], 1 }
 0x264   :  { %487 = vsyncpa [#allocation4], 1 }

</bundles_post_ra>
